<compile_context>
chip_gen: v6e
topology: v6e:2x2x1
jax: 0.10.0
libtpu: 0.0.40
codegen_flags: <defaults>
</compile_context>

<pallas_src>
import jax
import jax.numpy as jnp
from jax.experimental import pallas as pl
from jax.experimental.pallas import tpu as pltpu


def critic_kernel(x_ref, w1_ref, b1_ref, w2_ref, b2_ref, w3_ref, b3_ref, o_ref):
    """One batch tile of the Critic MLP.

    x_ref  : (TM, obs_dim)  float32 (cast to compute dtype in-kernel)
    w1_ref : (obs_dim, H)   compute dtype (f32 or bf16)
    b1_ref : (1, H)         compute dtype
    w2_ref : (H, H)         compute dtype
    b2_ref : (1, H)         compute dtype
    w3_ref : (1, H)         compute dtype (value-head weights stored as a row)
    b3_ref : (1,)           f32 scalar in SMEM
    o_ref  : (1, 1, TM)     f32, lane-dense output (one value per batch row)
    """
    cd = w1_ref.dtype

    # Cast the input tile here (cheap VPU op, hidden under the pipeline) rather
    # than materializing a bf16 copy of x in HBM in the wrapper.
    x = x_ref[...].astype(cd)

    # Layer 1: (TM, obs) @ (obs, H); f32 MXU accumulation, then bias + tanh in
    # the compute dtype (bf16 on v6e/v7x halves EUP work; f32 path for v5e).
    h1 = jnp.tanh(
        jnp.dot(x, w1_ref[...], preferred_element_type=jnp.float32).astype(cd)
        + b1_ref[...]
    )
    # Layer 2: (TM, H) @ (H, H); h1 is already in the MXU dtype (no extra cast).
    h2 = jnp.tanh(
        jnp.dot(h1, w2_ref[...], preferred_element_type=jnp.float32).astype(cd)
        + b2_ref[...]
    )
    # Layer 3 (value head): contract the hidden axis of both operands,
    # (1, H) x (TM, H) -> (1, TM), so the result is already lane-dense and the
    # XLU transpose of h2 happens on the narrow-dtype copy.
    v = jax.lax.dot_general(
        w3_ref[...], h2,
        dimension_numbers=(((1,), (1,)), ((), ())),
        preferred_element_type=jnp.float32,
    )
    o_ref[...] = (v + b3_ref[0]).reshape(o_ref.shape).astype(o_ref.dtype)


def _round_up(v, m):
    return m * ((v + m - 1) // m)


def critic_forward(x, params, *, tm=None, compute_dtype=jnp.bfloat16):
    """Critic forward pass via a fused Pallas kernel.

    x: (B, obs_dim) float32 (any B; padded internally to a multiple of the tile).
    params: dict with w1 (obs,H), b1 (1,H), w2 (H,H), b2 (1,H), w3 (H,1), b3 (1,1).
    Returns (B, 1) float32.
    """
    B, obs_dim = x.shape
    H = params["w1"].shape[1]

    # Batch tile selection:
    #   * small batches: single tile (one grid step), rounded to 128 lanes.
    #   * large batches: tile in the 512-2048 range to amortize the ~0.35us
    #     per-step overhead, capped so grid >= 2 so the "parallel" batch axis
    #     still shards across both v7x TensorCores.
    if tm is None:
        if B <= 256:
            tm = _round_up(max(B, 1), 128)
        else:
            tm = min(2048, _round_up(pl.cdiv(B, 2), 128))
    assert tm % 128 == 0

    Bp = tm * pl.cdiv(B, tm)
    if Bp != B:
        # Only touch x when the batch is ragged; otherwise the kernel reads the
        # caller's f32 array directly (no extra HBM pass).
        x = jnp.pad(x, ((0, Bp - B), (0, 0)))
    grid = (Bp // tm,)

    cd = compute_dtype
    itemsize = jnp.dtype(cd).itemsize
    w1 = params["w1"].astype(cd)
    w2 = params["w2"].astype(cd)
    w3_row = params["w3"].reshape(1, H).astype(cd)      # (H,1) -> (1,H) row
    b1 = params["b1"].astype(cd)
    b2 = params["b2"].astype(cd)
    b3 = params["b3"].reshape(1).astype(jnp.float32)    # scalar for SMEM

    # TODO(synk): for very large obs_dim (flattened pixel obs), add a trailing
    # "arbitrary" K grid axis over obs_dim with a VMEM f32 accumulator once
    # obs_dim*H*itemsize*2 buffers approaches ~8-16 MiB (v7x: 64 MiB physical /
    # 32 MiB scoped VMEM), and raise vmem_limit_bytes accordingly.
    # TODO(synk): optionally mark the grid-invariant weight/bias specs with
    # pipeline_mode=pl.Buffered(1) to drop their unused second buffer; negligible
    # at these shapes so omitted to keep the lowering maximally portable.

    cost = pl.CostEstimate(
        flops=2 * Bp * (obs_dim * H + H * H + H),
        transcendentals=2 * Bp * H,
        bytes_accessed=(Bp * obs_dim * 4 + Bp * 4
                        + (obs_dim * H + H * H + 3 * H) * itemsize + 4),
    )

    out_slab = pl.pallas_call(
        critic_kernel,
        out_shape=jax.ShapeDtypeStruct((grid[0], 1, tm), jnp.float32),
        grid_spec=pltpu.PrefetchScalarGridSpec(
            num_scalar_prefetch=0,
            grid=grid,
            in_specs=[
                # x: tile over batch (f32, cast in-kernel)
                pl.BlockSpec((tm, obs_dim), lambda i: (i, 0)),
                # weights / biases: whole array, resident across grid steps
                pl.BlockSpec((obs_dim, H), lambda i: (0, 0)),
                pl.BlockSpec((1, H), lambda i: (0, 0)),
                pl.BlockSpec((H, H), lambda i: (0, 0)),
                pl.BlockSpec((1, H), lambda i: (0, 0)),
                pl.BlockSpec((1, H), lambda i: (0, 0)),
                # b3: scalar via SMEM (no VMEM tile / DMA slot)
                pl.BlockSpec(memory_space=pltpu.MemorySpace.SMEM),
            ],
            out_specs=pl.BlockSpec((1, 1, tm), lambda i: (i, 0, 0)),
        ),
        compiler_params=pltpu.CompilerParams(
            dimension_semantics=("parallel",),
        ),
        cost_estimate=cost,
    )(x, w1, b1, w2, b2, w3_row, b3)

    # (G, 1, TM) lane-dense slab -> (Bp, 1) column (row g*TM + t lives at [g,0,t]).
    return out_slab.reshape(Bp, 1)[:B]


def init_critic_params(key, obs_dim, hidden=128):
    """Deterministic He ('kaiming') initialization, matching init_type='he'."""
    k1, k2, k3 = jax.random.split(key, 3)

    def he(k, fan_in, shape):
        std = jnp.sqrt(2.0 / fan_in)
        return jax.random.normal(k, shape, dtype=jnp.float32) * std

    return {
        "w1": he(k1, obs_dim, (obs_dim, hidden)),
        "b1": jnp.zeros((1, hidden), jnp.float32),
        "w2": he(k2, hidden, (hidden, hidden)),
        "b2": jnp.zeros((1, hidden), jnp.float32),
        "w3": he(k3, hidden, (hidden, 1)),
        "b3": jnp.zeros((1, 1), jnp.float32),
    }


def critic_ref(x, p):
    """Pure-JAX reference of the PyTorch forward."""
    h = jnp.tanh(x @ p["w1"] + p["b1"])
    h = jnp.tanh(h @ p["w2"] + p["b2"])
    return h @ p["w3"] + p["b3"]


if __name__ == "__main__":
    key = jax.random.PRNGKey(0)
    k_x, k_x2, k_p = jax.random.split(key, 3)

    B, OBS = 8, 16          # small shapes: batch=8, flattened obs dim=16
    x = jax.random.normal(k_x, (B, OBS), dtype=jnp.float32)
    params = init_critic_params(k_p, OBS, hidden=128)

    ref = critic_ref(x, params)

    # float32 compute path: correctness check against the reference
    # (both sides use default TPU matmul precision, so allow ~1e-3 slack).
    out_f32 = jax.block_until_ready(
        critic_forward(x, params, compute_dtype=jnp.float32))
    assert out_f32.shape == (B, 1)
    assert jnp.allclose(out_f32, ref, atol=5e-3, rtol=5e-3), "f32 mismatch vs reference"

    # bf16 MXU + bf16 tanh path (default): f32 accumulation, looser tolerance.
    out_bf16 = jax.block_until_ready(critic_forward(x, params))
    assert out_bf16.shape == (B, 1)
    assert jnp.allclose(out_bf16, ref, atol=1e-1, rtol=1e-1), "bf16 mismatch vs reference"

    # Ragged batch exercising the multi-step grid + padding path (tm=256, grid=2).
    B2 = 300
    x2 = jax.random.normal(k_x2, (B2, OBS), dtype=jnp.float32)
    ref2 = critic_ref(x2, params)
    out2 = jax.block_until_ready(
        critic_forward(x2, params, compute_dtype=jnp.float32))
    assert out2.shape == (B2, 1)
    assert jnp.allclose(out2, ref2, atol=5e-3, rtol=5e-3), "ragged-batch mismatch"

    print("KERNEL_OK")
</pallas_src>

<mosaic_0001>
module attributes {stable_mosaic.version = 11 : i64} {
  func.func @critic_kernel(%arg0: i32, %arg1: memref<128x16xf32, #tpu.memory_space<vmem>>, %arg2: memref<16x128xf32, #tpu.memory_space<vmem>>, %arg3: memref<1x128xf32, #tpu.memory_space<vmem>>, %arg4: memref<128x128xf32, #tpu.memory_space<vmem>>, %arg5: memref<1x128xf32, #tpu.memory_space<vmem>>, %arg6: memref<1x128xf32, #tpu.memory_space<vmem>>, %arg7: memref<1xf32, #tpu.memory_space<smem>>, %arg8: memref<1x1x128xf32, #tpu.memory_space<vmem>>) attributes {dimension_semantics = [#tpu.dimension_semantics<parallel>], iteration_bounds = array<i64: 1>, scalar_prefetch = 0 : i64, scratch_operands = 0 : i64, tpu.core_type = #tpu.core_type<tc>, window_params = [{transform_indices = @transform_0, window_bounds = array<i64: 128, 16>}, {pipeline_mode = #tpu.pipeline_mode<synchronous>, transform_indices = @transform_1, window_bounds = array<i64: 16, 128>}, {pipeline_mode = #tpu.pipeline_mode<synchronous>, transform_indices = @transform_2, window_bounds = array<i64: 1, 128>}, {pipeline_mode = #tpu.pipeline_mode<synchronous>, transform_indices = @transform_3, window_bounds = array<i64: 128, 128>}, {pipeline_mode = #tpu.pipeline_mode<synchronous>, transform_indices = @transform_4, window_bounds = array<i64: 1, 128>}, {pipeline_mode = #tpu.pipeline_mode<synchronous>, transform_indices = @transform_5, window_bounds = array<i64: 1, 128>}, {transform_indices = @transform_6, window_bounds = array<i64: 1>}, {transform_indices = @transform_7, window_bounds = array<i64: 1, 1, 128>}]} {
    %c0 = arith.constant 0 : index
    %c0_0 = arith.constant 0 : index
    %0 = vector.load %arg1[%c0, %c0_0] : memref<128x16xf32, #tpu.memory_space<vmem>>, vector<128x16xf32>
    %c0_1 = arith.constant 0 : index
    %c0_2 = arith.constant 0 : index
    %1 = vector.load %arg2[%c0_1, %c0_2] : memref<16x128xf32, #tpu.memory_space<vmem>>, vector<16x128xf32>
    %cst = arith.constant dense<0.000000e+00> : vector<128x128xf32>
    %2 = tpu.matmul %0, %1, %cst {dimension_numbers = #tpu.dot_dimension_numbers<[1], [0], [0], [1], [0, 0, 1, 1], [], []>} : vector<128x16xf32>, vector<16x128xf32>, vector<128x128xf32> -> vector<128x128xf32>
    %c0_3 = arith.constant 0 : index
    %c0_4 = arith.constant 0 : index
    %3 = vector.load %arg3[%c0_3, %c0_4] : memref<1x128xf32, #tpu.memory_space<vmem>>, vector<1x128xf32>
    %4 = vector.broadcast %3 : vector<1x128xf32> to vector<128x128xf32>
    %5 = arith.addf %2, %4 : vector<128x128xf32>
    %6 = math.tanh %5 : vector<128x128xf32>
    %c0_5 = arith.constant 0 : index
    %c0_6 = arith.constant 0 : index
    %7 = vector.load %arg4[%c0_5, %c0_6] : memref<128x128xf32, #tpu.memory_space<vmem>>, vector<128x128xf32>
    %cst_7 = arith.constant dense<0.000000e+00> : vector<128x128xf32>
    %8 = tpu.matmul %6, %7, %cst_7 {dimension_numbers = #tpu.dot_dimension_numbers<[1], [0], [0], [1], [0, 0, 1, 1], [], []>} : vector<128x128xf32>, vector<128x128xf32>, vector<128x128xf32> -> vector<128x128xf32>
    %c0_8 = arith.constant 0 : index
    %c0_9 = arith.constant 0 : index
    %9 = vector.load %arg5[%c0_8, %c0_9] : memref<1x128xf32, #tpu.memory_space<vmem>>, vector<1x128xf32>
    %10 = vector.broadcast %9 : vector<1x128xf32> to vector<128x128xf32>
    %11 = arith.addf %8, %10 : vector<128x128xf32>
    %12 = math.tanh %11 : vector<128x128xf32>
    %c0_10 = arith.constant 0 : index
    %c0_11 = arith.constant 0 : index
    %13 = vector.load %arg6[%c0_10, %c0_11] : memref<1x128xf32, #tpu.memory_space<vmem>>, vector<1x128xf32>
    %cst_12 = arith.constant dense<0.000000e+00> : vector<1x128xf32>
    %14 = tpu.matmul %13, %12, %cst_12 {dimension_numbers = #tpu.dot_dimension_numbers<[1], [1], [0], [0], [0, 0, 1, 0], [], []>} : vector<1x128xf32>, vector<128x128xf32>, vector<1x128xf32> -> vector<1x128xf32>
    %c0_13 = arith.constant 0 : index
    %15 = memref.load %arg7[%c0_13] : memref<1xf32, #tpu.memory_space<smem>>
    %16 = vector.broadcast %15 : f32 to vector<1x128xf32>
    %17 = arith.addf %14, %16 : vector<1x128xf32>
    %18 = vector.shape_cast %17 : vector<1x128xf32> to vector<1x1x128xf32>
    %c0_14 = arith.constant 0 : index
    %c0_15 = arith.constant 0 : index
    %c0_16 = arith.constant 0 : index
    %19 = vector.load %arg8[%c0_14, %c0_15, %c0_16] : memref<1x1x128xf32, #tpu.memory_space<vmem>>, vector<1x1x128xf32>
    tpu.vector_store %arg8[%c0_14, %c0_15, %c0_16], %18 {strides = array<i32>} : memref<1x1x128xf32, #tpu.memory_space<vmem>>, vector<1x1x128xf32>,
    return
  }
  func.func @transform_0(%arg0: i32) -> (i32, i32) {
    %c0_i32 = arith.constant 0 : i32
    %c0_i32_0 = arith.constant 0 : i32
    return %arg0, %c0_i32 : i32, i32
  }
  func.func @transform_1(%arg0: i32) -> (i32, i32) {
    %c0_i32 = arith.constant 0 : i32
    %c0_i32_0 = arith.constant 0 : i32
    %c0_i32_1 = arith.constant 0 : i32
    return %c0_i32, %c0_i32_0 : i32, i32
  }
  func.func @transform_2(%arg0: i32) -> (i32, i32) {
    %c0_i32 = arith.constant 0 : i32
    %c0_i32_0 = arith.constant 0 : i32
    %c0_i32_1 = arith.constant 0 : i32
    return %c0_i32, %c0_i32_0 : i32, i32
  }
  func.func @transform_3(%arg0: i32) -> (i32, i32) {
    %c0_i32 = arith.constant 0 : i32
    %c0_i32_0 = arith.constant 0 : i32
    %c0_i32_1 = arith.constant 0 : i32
    return %c0_i32, %c0_i32_0 : i32, i32
  }
  func.func @transform_4(%arg0: i32) -> (i32, i32) {
    %c0_i32 = arith.constant 0 : i32
    %c0_i32_0 = arith.constant 0 : i32
    %c0_i32_1 = arith.constant 0 : i32
    return %c0_i32, %c0_i32_0 : i32, i32
  }
  func.func @transform_5(%arg0: i32) -> (i32, i32) {
    %c0_i32 = arith.constant 0 : i32
    %c0_i32_0 = arith.constant 0 : i32
    %c0_i32_1 = arith.constant 0 : i32
    return %c0_i32, %c0_i32_0 : i32, i32
  }
  func.func @transform_6(%arg0: i32) -> i32 {
    %c0_i32 = arith.constant 0 : i32
    %c0_i32_0 = arith.constant 0 : i32
    return %c0_i32 : i32
  }
  func.func @transform_7(%arg0: i32) -> (i32, i32, i32) {
    %c0_i32 = arith.constant 0 : i32
    %c0_i32_0 = arith.constant 0 : i32
    %c0_i32_1 = arith.constant 0 : i32
    return %arg0, %c0_i32, %c0_i32_0 : i32, i32, i32
  }
}

</mosaic_0001>

<bundles_post_ra>
// kernel: tpu_custom_call.1
= control target key start
LH: loop header
LB: loop body
LE: loop exit
PB: predicated region body
PF: predicated region fallthrough
CT: control target
= control target key end

     0   :  { %vm53_vm0 = vcmask 130048   ;;  %s1048_s0 = inlined_call_operand.vmem [shape: f32[128,16], index: 0, kind: input, shape index: {}]   ;;  %s1049_s1 = inlined_call_operand.vmem [shape: f32[16,128], index: 1, kind: input, shape index: {}]   ;;  %s1050_s2 = inlined_call_operand.vmem [shape: f32[1,128], index: 2, kind: input, shape index: {}]   ;;  %s1051_s3 = inlined_call_operand.vmem [shape: f32[128,128], index: 3, kind: input, shape index: {}]   ;;  %s1052_s4 = inlined_call_operand.vmem [shape: f32[1,128], index: 4, kind: input, shape index: {}]   ;;  %s1053_s5 = inlined_call_operand.vmem [shape: f32[1,128], index: 5, kind: input, shape index: {}]   ;;  %s1054_s6 = inlined_call_operand.<no memory space> [shape: f32[1], index: 6, kind: input, shape index: {}]   ;;  %s1055_s7 = inlined_call_operand.hbm [shape: f32[1,1,128], index: 7, kind: output, shape index: {}]  }
   0x1   :  { %v45_v0 = vld [vmem:[%s1049_s1 + $0x8] sm:$0xff]  ;;  %v44_v1 = vld [vmem:[%s1049_s1] sm:$0xff]  ;;  %v30_v4 = vld [vmem:[%s1048_s0 + $0x10] sm:$0xff] }
   0x2   :  { %v28_v2 = vld [vmem:[%s1048_s0] sm:$0xff]  ;;  %620 = vmatprep.subr.mxu1 %v45_v0  ;;  %v29_v3 = vld [vmem:[%s1048_s0 + $0x8] sm:$0xff]  ;;  %v31_v5 = vld [vmem:[%s1048_s0 + $0x18] sm:$0xff] }
   0x3   :  { %624 = vmatprep.mubr.msk.f32.mxu1 %vm53_vm0, %v28_v2  ;;  %621 = vmatpush3.msra.mxu1 %v45_v0  ;;  %v278_v6 = vld [vmem:[%s1051_s3 + $0x78] sm:$0xff]  ;;  %v277_v7 = vld [vmem:[%s1051_s3 + $0x70] sm:$0xff]  ;;  %v32_v8 = vld [vmem:[%s1048_s0 + $0x20] sm:$0xff] }
   0x4   :  { %622 = vmatprep.subr.mxu1 %v44_v1  ;;  %v276_v9 = vld [vmem:[%s1051_s3 + $0x68] sm:$0xff] }
   0x5   :  { %623 = vmatpush3.msra.mxu1 %v44_v1 }
   0x6   :  { %625 = vmatmul.mubr.msk.f32.vlgmr.msra.gmra.mxu1 %vm53_vm0, %v29_v3  ;;  %648 = vmatprep.subr.mxu1 %v278_v6 }
   0x7   :  { %627 = vmatprep.mubr.msk.f32.mxu1 %vm53_vm0, %v30_v4  ;;  %649 = vmatpush3.msra.mxu1 %v278_v6 }
   0x8   :  { %13 = vsyncpa [#allocation4], 0  ;;  %650 = vmatprep.subr.mxu1 %v277_v7  ;;  %v33_v10 = vld [vmem:[%s1048_s0 + $0x28] sm:$0xff]  ;;  %v275_v11 = vld [vmem:[%s1051_s3 + $0x60] sm:$0xff]  ;;  %vm829_vm1 = vmmov 0   ;;  %s830_s24 = smov [#allocation3]  }
   0x9   :  { %651 = vmatpush3.msra.mxu1 %v277_v7  ;;  %v34_v12 = vld [vmem:[%s1048_s0 + $0x30] sm:$0xff]  ;;  %v274_v13 = vld [vmem:[%s1051_s3 + $0x58] sm:$0xff]  ;;  %v36_v16 = vld [vmem:[%s1048_s0 + $0x40] sm:$0xff]  ;;  %s527_s25 = sshll.u32 %s830_s24, 4  ;;  %s528_s25 = int_to_ptr.vmem [resolvable:$true] %s527_s25 }
   0xa   :  { %628 = vmatmul.mubr.msk.f32.gmra.mxu1 %vm53_vm0, %v31_v5  ;;  %652 = vmatprep.subr.mxu1 %v276_v9  ;;  %v35_v14 = vld [vmem:[%s1048_s0 + $0x38] sm:$0xff]  ;;  %v273_v15 = vld [vmem:[%s1051_s3 + $0x50] sm:$0xff]  ;;  %v272_v17 = vld [vmem:[%s1051_s3 + $0x48] sm:$0xff]  ;;  %s806_s26 = scalar_lea.vmem %s528_s25, 16  ;;  %s810_s27 = scalar_lea.vmem %s528_s25, 32 }
   0xb   :  { %630 = vmatprep.mubr.msk.f32.mxu1 %vm53_vm0, %v32_v8  ;;  %653 = vmatpush3.msra.mxu1 %v276_v9  ;;  %v37_v18 = vld [vmem:[%s1048_s0 + $0x48] sm:$0xff]  ;;  %v38_v19 = vld [vmem:[%s1048_s0 + $0x50] sm:$0xff]  ;;  %v39_v20 = vld [vmem:[%s1048_s0 + $0x58] sm:$0xff]  ;;  %p807_p0 = scmp.ne.s32.totalorder %s528_s25, %s806_s26  ;;  %p811_p1 = scmp.lt.s32.totalorder %s528_s25, %s528_s25 }
   0xc   :  { %654 = vmatprep.subr.mxu1 %v275_v11  ;;  %v40_v21 = vld [vmem:[%s1048_s0 + $0x60] sm:$0xff]  ;;  %v41_v22 = vld [vmem:[%s1048_s0 + $0x68] sm:$0xff]  ;;  %v42_v23 = vld [vmem:[%s1048_s0 + $0x70] sm:$0xff]  ;;  %p812_p2 = scmp.lt.s32.totalorder %s810_s27, %s806_s26 }
   0xd   :  { %655 = vmatpush3.msra.mxu1 %v275_v11  ;;  %v43_v24 = vld [vmem:[%s1048_s0 + $0x78] sm:$0xff]  ;;  %v271_v25 = vld [vmem:[%s1051_s3 + $0x40] sm:$0xff]  ;;  %v269_v27 = vld [vmem:[%s1051_s3 + $0x30] sm:$0xff] }
   0xe   :  { %631 = vmatmul.mubr.msk.f32.gmra.mxu1 %vm53_vm0, %v33_v10  ;;  %656 = vmatprep.subr.mxu1 %v274_v13  ;;  %v270_v26 = vld [vmem:[%s1051_s3 + $0x38] sm:$0xff]  ;;  %v268_v28 = vld [vmem:[%s1051_s3 + $0x28] sm:$0xff]  ;;  %v267_v29 = vld [vmem:[%s1051_s3 + $0x20] sm:$0xff]  ;;  %p813_p3 = por %p812_p2, %p811_p1 }
   0xf   :  { %633 = vmatprep.mubr.msk.f32.mxu1 %vm53_vm0, %v34_v12  ;;  %657 = vmatpush3.msra.mxu1 %v274_v13  ;;  %v266_v30 = vld [vmem:[%s1051_s3 + $0x18] sm:$0xff]  ;;  %v265_v31 = vld [vmem:[%s1051_s3 + $0x10] sm:$0xff]  ;;  %v264_v32 = vld [vmem:[%s1051_s3 + $0x8] sm:$0xff] }
  0x10   :  { %658 = vmatprep.subr.mxu1 %v273_v15  ;;  %v263_v33 = vld [vmem:[%s1051_s3] sm:$0xff]  ;;  %p814_p4 = pnand %p813_p3, %p807_p0 }
  0x11   :  { %659 = vmatpush3.msra.mxu1 %v273_v15  ;;  %v535_v34 = vld [vmem:[%s1050_s2] ss:$0 sm:$0xff] }
  0x12   :  { %634 = vmatmul.mubr.msk.f32.gmra.mxu1 %vm53_vm0, %v35_v14  ;;  %660 = vmatprep.subr.mxu1 %v272_v17 }
  0x13   :  { %636 = vmatprep.mubr.msk.f32.mxu1 %vm53_vm0, %v36_v16  ;;  %661 = vmatpush3.msra.mxu1 %v272_v17 }
  0x14   :  { %662 = vmatprep.subr.mxu1 %v271_v25 }
  0x15   :  { %663 = vmatpush3.msra.mxu1 %v271_v25 }
  0x16   :  { %637 = vmatmul.mubr.msk.f32.gmra.mxu1 %vm53_vm0, %v37_v18  ;;  %664 = vmatprep.subr.mxu1 %v270_v26 }
  0x17   :  { %639 = vmatprep.mubr.msk.f32.mxu1 %vm53_vm0, %v38_v19  ;;  %665 = vmatpush3.msra.mxu1 %v270_v26  ;;  %v828_v19 = vmov 0.0  }
  0x18   :  { %666 = vmatprep.subr.mxu1 %v269_v27  ;;  %704 = vmatprep.subr.mxu0 %v828_v19 }
  0x19   :  { %667 = vmatpush3.msra.mxu1 %v269_v27  ;;  %736 = vmatprep.mubr.msk.f32.mxu0 %vm829_vm1, %v828_v19 }
  0x1a   :  { %640 = vmatmul.mubr.msk.f32.gmra.mxu1 %vm53_vm0, %v39_v20  ;;  %668 = vmatprep.subr.mxu1 %v268_v28 }
  0x1b   :  { %642 = vmatprep.mubr.msk.f32.mxu1 %vm53_vm0, %v40_v21  ;;  %669 = vmatpush3.msra.mxu1 %v268_v28 }
  0x1c   :  { %670 = vmatprep.subr.mxu1 %v267_v29 }
  0x1d   :  { %671 = vmatpush3.msra.mxu1 %v267_v29 }
  0x1e   :  { %643 = vmatmul.mubr.msk.f32.gmra.mxu1 %vm53_vm0, %v41_v22  ;;  %672 = vmatprep.subr.mxu1 %v266_v30 }
  0x1f   :  { %645 = vmatprep.mubr.msk.f32.mxu1 %vm53_vm0, %v42_v23  ;;  %673 = vmatpush3.msra.mxu1 %v266_v30 }
  0x20   :  { %674 = vmatprep.subr.mxu1 %v265_v31 }
  0x21   :  { %675 = vmatpush3.msra.mxu1 %v265_v31 }
  0x22   :  { %646 = vmatmul.mubr.msk.f32.gmra.mxu1 %vm53_vm0, %v43_v24  ;;  %676 = vmatprep.subr.mxu1 %v264_v32 }
  0x23   :  { %677 = vmatpush3.msra.mxu1 %v264_v32 }
  0x24   :  { %678 = vmatprep.subr.mxu1 %v263_v33 }
  0x25   :  { %679 = vmatpush3.msra.mxu1 %v263_v33 }
  0xc6   :  { %v626_v35 = vpop.f32.mrf.mxu1 }
  0xc7   :  { %v174_v36 = vadd.f32 %v626_v35, %v535_v34 }
  0xc8   :  { %v168_v37 = vpop.f32.mrf.mxu1 }
  0xc9   :  { %v169_v38 = vadd.f32 %v535_v34, %v168_v37 }
  0xca   :  { %v629_v39 = vpop.f32.mrf.mxu1 }
  0xcb   :  { %742 = vtanh.f32 %v169_v38  ;;  %v184_v40 = vadd.f32 %v629_v39, %v535_v34 }
  0xcc   :  { %744 = vtanh.f32 %v174_v36  ;;  %v178_v41 = vpop.f32.mrf.mxu1 }
  0xcd   :  { %v179_v42 = vadd.f32 %v535_v34, %v178_v41 }
  0xce   :  { %v632_v43 = vpop.f32.mrf.mxu1 }
  0xcf   :  { %746 = vtanh.f32 %v179_v42  ;;  %v194_v44 = vadd.f32 %v632_v43, %v535_v34 }
  0xd0   :  { %748 = vtanh.f32 %v184_v40  ;;  %v188_v45 = vpop.f32.mrf.mxu1 }
  0xd1   :  { %v189_v46 = vadd.f32 %v535_v34, %v188_v45 }
  0xd2   :  { %v635_v47 = vpop.f32.mrf.mxu1 }
  0xd3   :  { %750 = vtanh.f32 %v189_v46  ;;  %v204_v48 = vadd.f32 %v635_v47, %v535_v34 }
  0xd4   :  { %752 = vtanh.f32 %v194_v44  ;;  %v198_v49 = vpop.f32.mrf.mxu1 }
  0xd5   :  { %v199_v50 = vadd.f32 %v535_v34, %v198_v49 }
  0xd6   :  { %v638_v51 = vpop.f32.mrf.mxu1 }
  0xd7   :  { %754 = vtanh.f32 %v199_v50  ;;  %v214_v53 = vadd.f32 %v638_v51, %v535_v34 }
  0xd8   :  { %v743_v52 = vpop.eup %742  ;;  %756 = vtanh.f32 %v204_v48  ;;  %v208_v54 = vpop.f32.mrf.mxu1 }
  0xd9   :  { %v745_v55 = vpop.eup %744  ;;  %v209_v56 = vadd.f32 %v535_v34, %v208_v54  ;;  %680 = vmatprep.mubr.f32.mxu1 %v743_v52 }
  0xda   :  { %v641_v57 = vpop.f32.mrf.mxu1  ;;  %681 = vmatmul.mubr.f32.vlgmr.msra.gmra.mxu1 %v745_v55 }
  0xdb   :  { %758 = vtanh.f32 %v209_v56  ;;  %v224_v59 = vadd.f32 %v641_v57, %v535_v34 }
  0xdc   :  { %v747_v58 = vpop.eup %746  ;;  %760 = vtanh.f32 %v214_v53  ;;  %v218_v60 = vpop.f32.mrf.mxu1 }
  0xdd   :  { %v749_v61 = vpop.eup %748  ;;  %v219_v62 = vadd.f32 %v535_v34, %v218_v60  ;;  %683 = vmatprep.mubr.f32.mxu1 %v747_v58 }
  0xde   :  { %v644_v63 = vpop.f32.mrf.mxu1  ;;  %684 = vmatmul.mubr.f32.gmra.mxu1 %v749_v61 }
  0xdf   :  { %762 = vtanh.f32 %v219_v62  ;;  %v234_v1 = vadd.f32 %v644_v63, %v535_v34 }
  0xe0   :  { %v751_v0 = vpop.eup %750  ;;  %764 = vtanh.f32 %v224_v59  ;;  %v228_v2 = vpop.f32.mrf.mxu1 }
  0xe1   :  { %v753_v3 = vpop.eup %752  ;;  %v229_v4 = vadd.f32 %v535_v34, %v228_v2  ;;  %686 = vmatprep.mubr.f32.mxu1 %v751_v0 }
  0xe2   :  { %v647_v5 = vpop.f32.mrf.mxu1  ;;  %687 = vmatmul.mubr.f32.gmra.mxu1 %v753_v3 }
  0xe3   :  { %766 = vtanh.f32 %v229_v4  ;;  %v244_v7 = vadd.f32 %v647_v5, %v535_v34  ;;  %v447_v5 = vld [vmem:[%s1053_s5] sm:$0x1] }
  0xe4   :  { %v755_v6 = vpop.eup %754  ;;  %768 = vtanh.f32 %v234_v1  ;;  %v238_v8 = vpop.f32.mrf.mxu1 }
  0xe5   :  { %v757_v9 = vpop.eup %756  ;;  %v239_v10 = vadd.f32 %v535_v34, %v238_v8  ;;  %689 = vmatprep.mubr.f32.mxu1 %v755_v6  ;;  %v1003_v34 = vld [vmem:[%s1052_s4] ss:$0 sm:$0xff]  ;;  %v449_v6 = vstv %s1054_s6 }
  0xe6   :  { %690 = vmatmul.mubr.f32.gmra.mxu1 %v757_v9 }
  0xe7   :  { %770 = vtanh.f32 %v239_v10 }
  0xe8   :  { %v759_v11 = vpop.eup %758  ;;  %772 = vtanh.f32 %v244_v7 }
  0xe9   :  { %v761_v12 = vpop.eup %760  ;;  %692 = vmatprep.mubr.f32.mxu1 %v759_v11 }
  0xea   :  { %693 = vmatmul.mubr.f32.gmra.mxu1 %v761_v12 }
  0xec   :  { %v763_v13 = vpop.eup %762 }
  0xed   :  { %v765_v14 = vpop.eup %764  ;;  %695 = vmatprep.mubr.f32.mxu1 %v763_v13 }
  0xee   :  { %696 = vmatmul.mubr.f32.gmra.mxu1 %v765_v14 }
  0xf0   :  { %v767_v15 = vpop.eup %766 }
  0xf1   :  { %v769_v16 = vpop.eup %768  ;;  %698 = vmatprep.mubr.f32.mxu1 %v767_v15 }
  0xf2   :  { %699 = vmatmul.mubr.f32.gmra.mxu1 %v769_v16 }
  0xf4   :  { %v771_v17 = vpop.eup %770 }
  0xf5   :  { %v773_v18 = vpop.eup %772  ;;  %701 = vmatprep.mubr.f32.mxu1 %v771_v17 }
  0xf6   :  { %702 = vmatmul.mubr.f32.gmra.mxu1 %v773_v18 }
 0x19a   :  { %v994_v20 = vpop.f32.mrf.mxu1 }
 0x19b   :  { %v358_v61 = vadd.f32 %v994_v20, %v1003_v34 }
 0x19c   :  { %v996_v21 = vpop.f32.mrf.mxu1 }
 0x19d   :  { %v353_v63 = vadd.f32 %v1003_v34, %v996_v21 }
 0x19e   :  { %v685_v22 = vpop.f32.mrf.mxu1 }
 0x19f   :  { %v368_v57 = vadd.f32 %v685_v22, %v1003_v34 }
 0x1a0   :  { %v998_v23 = vpop.f32.mrf.mxu1 }
 0x1a1   :  { %v363_v59 = vadd.f32 %v1003_v34, %v998_v23 }
 0x1a2   :  { %v688_v24 = vpop.f32.mrf.mxu1 }
 0x1a3   :  { %v378_v53 = vadd.f32 %v688_v24, %v1003_v34 }
 0x1a4   :  { %v372_v25 = vpop.f32.mrf.mxu1 }
 0x1a5   :  { %v373_v55 = vadd.f32 %v1003_v34, %v372_v25 }
 0x1a6   :  { %v691_v26 = vpop.f32.mrf.mxu1 }
 0x1a7   :  { %v388_v49 = vadd.f32 %v691_v26, %v1003_v34 }
 0x1a8   :  { %v382_v27 = vpop.f32.mrf.mxu1 }
 0x1a9   :  { %v383_v51 = vadd.f32 %v1003_v34, %v382_v27 }
 0x1aa   :  { %v694_v28 = vpop.f32.mrf.mxu1 }
 0x1ab   :  { %v398_v45 = vadd.f32 %v694_v28, %v1003_v34 }
 0x1ac   :  { %v392_v29 = vpop.f32.mrf.mxu1 }
 0x1ad   :  { %v393_v47 = vadd.f32 %v1003_v34, %v392_v29 }
 0x1ae   :  { %v697_v30 = vpop.f32.mrf.mxu1 }
 0x1af   :  { %v408_v41 = vadd.f32 %v697_v30, %v1003_v34 }
 0x1b0   :  { %v402_v31 = vpop.f32.mrf.mxu1 }
 0x1b1   :  { %v403_v43 = vadd.f32 %v1003_v34, %v402_v31 }
 0x1b2   :  { %v700_v32 = vpop.f32.mrf.mxu1 }
 0x1b3   :  { %v418_v39 = vadd.f32 %v700_v32, %v1003_v34 }
 0x1b4   :  { %v412_v33 = vpop.f32.mrf.mxu1 }
 0x1b5   :  { %v413_v40 = vadd.f32 %v1003_v34, %v412_v33 }
 0x1b6   :  { %v703_v35 = vpop.f32.mrf.mxu1 }
 0x1b7   :  { %v428_v36 = vadd.f32 %v703_v35, %v1003_v34 }
 0x1b8   :  { %v422_v37 = vpop.f32.mrf.mxu1 }
 0x1b9   :  { %774 = vtanh.f32 %v428_v36  ;;  %v423_v38 = vadd.f32 %v1003_v34, %v422_v37 }
 0x1bb   :  { %776 = vtanh.f32 %v423_v38 }
 0x1bc   :  { %778 = vtanh.f32 %v418_v39 }
 0x1bd   :  { %780 = vtanh.f32 %v413_v40 }
 0x1be   :  { %782 = vtanh.f32 %v408_v41 }
 0x1bf   :  { %784 = vtanh.f32 %v403_v43 }
 0x1c0   :  { %786 = vtanh.f32 %v398_v45 }
 0x1c1   :  { %788 = vtanh.f32 %v393_v47 }
 0x1c2   :  { %790 = vtanh.f32 %v388_v49 }
 0x1c3   :  { %792 = vtanh.f32 %v383_v51 }
 0x1c4   :  { %794 = vtanh.f32 %v378_v53 }
 0x1c5   :  { %796 = vtanh.f32 %v373_v55 }
 0x1c6   :  { %v775_v42 = vpop.eup %774  ;;  %798 = vtanh.f32 %v368_v57 }
 0x1c7   :  { %705 = vmatpush3.xpose.msra.mxu0 %v775_v42  ;;  %800 = vtanh.f32 %v363_v59 }
 0x1c8   :  { %706 = vmatprep.subr.mxu0 %v828_v19  ;;  %v777_v44 = vpop.eup %776  ;;  %802 = vtanh.f32 %v358_v61 }
 0x1c9   :  { %v779_v46 = vpop.eup %778  ;;  %804 = vtanh.f32 %v353_v63 }
 0x1ca   :  { %v781_v48 = vpop.eup %780 }
 0x1cb   :  { %707 = vmatpush3.xpose.msra.mxu0 %v777_v44  ;;  %v783_v50 = vpop.eup %782 }
 0x1cc   :  { %708 = vmatprep.subr.mxu0 %v828_v19  ;;  %v785_v52 = vpop.eup %784 }
 0x1cd   :  { %v787_v54 = vpop.eup %786 }
 0x1ce   :  { %v789_v56 = vpop.eup %788 }
 0x1cf   :  { %709 = vmatpush3.xpose.msra.mxu0 %v779_v46  ;;  %v791_v58 = vpop.eup %790 }
 0x1d0   :  { %710 = vmatprep.subr.mxu0 %v828_v19  ;;  %v793_v60 = vpop.eup %792 }
 0x1d1   :  { %v795_v62 = vpop.eup %794 }
 0x1d2   :  { %v797_v0 = vpop.eup %796 }
 0x1d3   :  { %711 = vmatpush3.xpose.msra.mxu0 %v781_v48  ;;  %v799_v1 = vpop.eup %798 }
 0x1d4   :  { %712 = vmatprep.subr.mxu0 %v828_v19  ;;  %v801_v2 = vpop.eup %800 }
 0x1d5   :  { %v803_v3 = vpop.eup %802 }
 0x1d6   :  { %v805_v4 = vpop.eup %804 }
 0x1d7   :  { %713 = vmatpush3.xpose.msra.mxu0 %v783_v50 }
 0x1d8   :  { %714 = vmatprep.subr.mxu0 %v828_v19 }
 0x1db   :  { %715 = vmatpush3.xpose.msra.mxu0 %v785_v52 }
 0x1dc   :  { %716 = vmatprep.subr.mxu0 %v828_v19 }
 0x1df   :  { %717 = vmatpush3.xpose.msra.mxu0 %v787_v54 }
 0x1e0   :  { %718 = vmatprep.subr.mxu0 %v828_v19 }
 0x1e3   :  { %719 = vmatpush3.xpose.msra.mxu0 %v789_v56 }
 0x1e4   :  { %720 = vmatprep.subr.mxu0 %v828_v19 }
 0x1e7   :  { %721 = vmatpush3.xpose.msra.mxu0 %v791_v58 }
 0x1e8   :  { %722 = vmatprep.subr.mxu0 %v828_v19 }
 0x1eb   :  { %723 = vmatpush3.xpose.msra.mxu0 %v793_v60 }
 0x1ec   :  { %724 = vmatprep.subr.mxu0 %v828_v19 }
 0x1ef   :  { %725 = vmatpush3.xpose.msra.mxu0 %v795_v62 }
 0x1f0   :  { %726 = vmatprep.subr.mxu0 %v828_v19 }
 0x1f3   :  { %727 = vmatpush3.xpose.msra.mxu0 %v797_v0 }
 0x1f4   :  { %728 = vmatprep.subr.mxu0 %v828_v19 }
 0x1f7   :  { %729 = vmatpush3.xpose.msra.mxu0 %v799_v1 }
 0x1f8   :  { %730 = vmatprep.subr.mxu0 %v828_v19 }
 0x1fb   :  { %731 = vmatpush3.xpose.msra.mxu0 %v801_v2 }
 0x1fc   :  { %732 = vmatprep.subr.mxu0 %v828_v19 }
 0x1ff   :  { %733 = vmatpush3.xpose.msra.mxu0 %v803_v3 }
 0x200   :  { %734 = vmatprep.subr.mxu0 %v828_v19 }
 0x203   :  { %735 = vmatpush3.xpose.msra.mxu0 %v805_v4 }
 0x206   :  { %737 = vmatmul.mubr.f32.vlgmr.msra.gmra.mxu0 %v447_v5 }
 0x2c6   :  { %v516_v7 = vpop.f32.mrf.mxu0 }
 0x2c7   :  { %v517_v8 = vadd.f32 %v516_v7, %v449_v6 }
 0x2c8   :  { %v738_v9 = vpop.f32.mrf.mxu0 }
 0x2c9   :  { %520 = vst [vmem:[#allocation3] sm:$0x1] %v517_v8 }
 0x2ca   :  { %817 = shalt.err (!%p814_p4)
}
 0x2cb   :  { %530 = dma.vmem_to_hbm [thread:$0]  %s528_s25, 16, %s1055_s7, [#allocation4]  }
 0x2cc   :  { %826 = dma.done.wait [#allocation4], 16  }
 0x2cd   :  { %827 = vsyncadd [#allocation4], 4294967280 }
 0x2ce   :  { %534 = vsyncpa [#allocation4], 1 }

</bundles_post_ra>
